<compile_context>
chip_gen: v5e
topology: v5e:2x2
jax: 0.10.0
libtpu: 0.0.40
codegen_flags: <defaults>
</compile_context>

<pallas_src>
import numpy as np
import jax
import jax.numpy as jnp
from jax import lax
from jax.experimental import pallas as pl
from jax.experimental.pallas import tpu as pltpu


# --------------------------------------------------------------------------------------
# Kernel 1: mag_sq + mel filterbank + hoisted layer-0 input projection (both directions)
#   rows are (t, b)-ordered:  gates0[d, r, :] = (|X|^2 @ fb)[r, :] @ W_ih0[d]^T + b0[d]
# --------------------------------------------------------------------------------------
def mel_gates0_kernel(xre_ref, xim_ref, fb_ref, w0t_ref, b0_ref, out_ref):
    # xre/xim: (Rc, F), fb: (F, M), w0t: (2, M, 4H), b0: (2, 1, 4H), out: (2, Rc, 4H)
    p = xre_ref[...] * xre_ref[...] + xim_ref[...] * xim_ref[...]          # (Rc, F)
    mel = jnp.dot(p, fb_ref[...], preferred_element_type=jnp.float32)       # (Rc, M)
    g_f = jnp.dot(mel, w0t_ref[0], preferred_element_type=jnp.float32) + b0_ref[0]
    g_b = jnp.dot(mel, w0t_ref[1], preferred_element_type=jnp.float32) + b0_ref[1]
    out_ref[0] = g_f.astype(out_ref.dtype)
    out_ref[1] = g_b.astype(out_ref.dtype)


def mel_gates0(xre2, xim2, fb, w0t, b0, rc):
    R, F_ = xre2.shape
    M = fb.shape[1]
    G = w0t.shape[-1]
    nrc = pl.cdiv(R, rc)
    return pl.pallas_call(
        mel_gates0_kernel,
        out_shape=jax.ShapeDtypeStruct((2, R, G), jnp.float32),
        grid_spec=pltpu.PrefetchScalarGridSpec(
            num_scalar_prefetch=0,
            grid=(nrc,),
            in_specs=[pl.BlockSpec((rc, F_), lambda r: (r, 0)),
                      pl.BlockSpec((rc, F_), lambda r: (r, 0)),
                      pl.BlockSpec((F_, M), lambda r: (0, 0)),
                      pl.BlockSpec((2, M, G), lambda r: (0, 0, 0)),
                      pl.BlockSpec((2, 1, G), lambda r: (0, 0, 0))],
            out_specs=pl.BlockSpec((2, rc, G), lambda r: (0, r, 0)),
        ),
        compiler_params=pltpu.CompilerParams(dimension_semantics=("parallel",)),
    )(xre2, xim2, fb, w0t, b0)


# --------------------------------------------------------------------------------------
# Kernel 2: hoisted input projection for layers >= 1 from the bidirectional hidden states
#   (replaces the concat:  gates[d'] = h_fwd @ W[d',:, :H]^T + h_bwd @ W[d',:, H:]^T + b)
#   Both output directions are produced per grid point so the (2, Rc, H) hidden-state
#   block is DMA'd from HBM only once (previous version read it twice, once per d').
# --------------------------------------------------------------------------------------
def gates_from_h_kernel(h_ref, wt_ref, b_ref, out_ref):
    # h: (2, Rc, H), wt: (4, H, 4H) = [d0_fwd, d0_bwd, d1_fwd, d1_bwd],
    # b: (2, 1, 4H), out: (2, Rc, 4H)
    h_f = h_ref[0]
    h_b = h_ref[1]
    g0 = (jnp.dot(h_f, wt_ref[0], preferred_element_type=jnp.float32)
          + jnp.dot(h_b, wt_ref[1], preferred_element_type=jnp.float32)
          + b_ref[0])
    g1 = (jnp.dot(h_f, wt_ref[2], preferred_element_type=jnp.float32)
          + jnp.dot(h_b, wt_ref[3], preferred_element_type=jnp.float32)
          + b_ref[1])
    out_ref[0] = g0.astype(out_ref.dtype)
    out_ref[1] = g1.astype(out_ref.dtype)


def gates_from_h(h2, wt4, bias, rc):
    # h2: (2, R, H), wt4: (4, H, 4H), bias: (2, 1, 4H) -> gates: (2, R, 4H)
    _, R, H = h2.shape
    G = wt4.shape[-1]
    nrc = pl.cdiv(R, rc)
    return pl.pallas_call(
        gates_from_h_kernel,
        out_shape=jax.ShapeDtypeStruct((2, R, G), jnp.float32),
        grid_spec=pltpu.PrefetchScalarGridSpec(
            num_scalar_prefetch=0,
            grid=(nrc,),
            in_specs=[pl.BlockSpec((2, rc, H), lambda r: (0, r, 0)),
                      pl.BlockSpec((4, H, G), lambda r: (0, 0, 0)),
                      pl.BlockSpec((2, 1, G), lambda r: (0, 0, 0))],
            out_specs=pl.BlockSpec((2, rc, G), lambda r: (0, r, 0)),
        ),
        compiler_params=pltpu.CompilerParams(dimension_semantics=("parallel",)),
    )(h2, wt4, bias)


# --------------------------------------------------------------------------------------
# Kernel 3: fused bidirectional LSTM recurrence, time-chunked.
#   grid = (direction [parallel], time-chunk [arbitrary, sequential])
#   Backward direction reads reversed chunks via the index_map and walks the chunk in
#   reverse, so its output lands in forward time order with no wrapper flips.
#   PyTorch gate order: i, f, g, o.  Padded (zero) gates keep (h, c) == 0, so zero-padding
#   the time axis to a chunk multiple is exactly equivalent to a shorter sequence.
# --------------------------------------------------------------------------------------
def lstm_bidir_kernel(gx_ref, whh_t_ref, out_ref, h_sc, c_sc):
    # gx: (Tc, B, 4H), whh_t: (H, 4H), out: (Tc, B, H), scratch h/c: (B, H)
    d = pl.program_id(0)

    @pl.when(pl.program_id(1) == 0)
    def _():
        h_sc[...] = jnp.zeros_like(h_sc)
        c_sc[...] = jnp.zeros_like(c_sc)

    Tc = gx_ref.shape[0]
    H = h_sc.shape[-1]
    whh_t = whh_t_ref[...]                                   # resident for the whole chunk

    def step(j, carry):
        # local position inside the chunk: j (fwd) or Tc-1-j (bwd), branch-free int math
        p = j + d * (Tc - 1 - 2 * j)
        g = gx_ref[p] + jnp.dot(h_sc[...], whh_t,
                                preferred_element_type=jnp.float32)   # (B, 4H)
        i = jax.nn.sigmoid(g[:, 0 * H:1 * H])
        f = jax.nn.sigmoid(g[:, 1 * H:2 * H])
        gg = jnp.tanh(g[:, 2 * H:3 * H])
        o = jax.nn.sigmoid(g[:, 3 * H:4 * H])
        c = f * c_sc[...] + i * gg
        h = o * jnp.tanh(c)
        c_sc[...] = c
        h_sc[...] = h
        out_ref[p] = h.astype(out_ref.dtype)                 # chunk flushed to HBM once
        return carry

    lax.fori_loop(0, Tc, step, 0, unroll=min(Tc, 8))


def lstm_bidir_layer(gates, whh_t, tc):
    # gates: (2, Tp, B, 4H), whh_t: (2, H, 4H) -> h: (2, Tp, B, H)
    _, Tp, B, G = gates.shape
    H = whh_t.shape[1]
    nct = Tp // tc

    def rev_map(d, t):
        # forward: chunk t;  backward: chunk nct-1-t  (reversal is free index arithmetic)
        tb = t + d * (nct - 1 - 2 * t)
        return (d, tb, 0, 0)

    return pl.pallas_call(
        lstm_bidir_kernel,
        out_shape=jax.ShapeDtypeStruct((2, Tp, B, H), jnp.float32),
        grid_spec=pltpu.PrefetchScalarGridSpec(
            num_scalar_prefetch=0,
            grid=(2, nct),
            in_specs=[pl.BlockSpec((None, tc, B, G), rev_map),
                      pl.BlockSpec((None, H, G), lambda d, t: (d, 0, 0))],
            out_specs=pl.BlockSpec((None, tc, B, H), rev_map),
            scratch_shapes=[pltpu.VMEM((B, H), jnp.float32),
                            pltpu.VMEM((B, H), jnp.float32)],
        ),
        compiler_params=pltpu.CompilerParams(
            dimension_semantics=("parallel", "arbitrary")),
    )(gates, whh_t)


# --------------------------------------------------------------------------------------
# Kernel 4: 1x1 Conv1d output layer + sigmoid + mask scaling on (t, b)-ordered rows
# --------------------------------------------------------------------------------------
def out_mask_kernel(h_ref, wt_ref, b_ref, o_ref):
    # h: (2, Rc, H), wt: (2, H, F), b: (1, F), o: (Rc, F)
    y = (jnp.dot(h_ref[0], wt_ref[0], preferred_element_type=jnp.float32)
         + jnp.dot(h_ref[1], wt_ref[1], preferred_element_type=jnp.float32)
         + b_ref[...])
    m = jax.nn.sigmoid(y)
    o_ref[...] = (m * (1.0 - 1e-5) + 1e-5).astype(o_ref.dtype)


def out_mask(h2, woutT, b_out2, rc):
    _, R, H = h2.shape
    F_ = woutT.shape[-1]
    nrc = pl.cdiv(R, rc)
    return pl.pallas_call(
        out_mask_kernel,
        out_shape=jax.ShapeDtypeStruct((R, F_), jnp.float32),
        grid_spec=pltpu.PrefetchScalarGridSpec(
            num_scalar_prefetch=0,
            grid=(nrc,),
            in_specs=[pl.BlockSpec((2, rc, H), lambda r: (0, r, 0)),
                      pl.BlockSpec((2, H, F_), lambda r: (0, 0, 0)),
                      pl.BlockSpec((1, F_), lambda r: (0, 0))],
            out_specs=pl.BlockSpec((rc, F_), lambda r: (r, 0)),
        ),
        compiler_params=pltpu.CompilerParams(dimension_semantics=("parallel",)),
    )(h2, woutT, b_out2)


# --------------------------------------------------------------------------------------
# Parameter construction (deterministic, shapes match the nn.Module __init__)
# --------------------------------------------------------------------------------------
def mel_filterbank(n_freq, n_mels, sample_rate=16000.0):
    """HTK-style triangular mel filterbank, same construction as torchaudio MelScale."""
    f_max = sample_rate / 2.0
    hz_to_mel = lambda f: 2595.0 * np.log10(1.0 + f / 700.0)
    mel_to_hz = lambda m: 700.0 * (10.0 ** (m / 2595.0) - 1.0)
    all_freqs = np.linspace(0.0, f_max, n_freq)
    m_pts = np.linspace(hz_to_mel(0.0), hz_to_mel(f_max), n_mels + 2)
    f_pts = mel_to_hz(m_pts)
    f_diff = f_pts[1:] - f_pts[:-1]
    slopes = f_pts[None, :] - all_freqs[:, None]           # (n_freq, n_mels+2)
    down = -slopes[:, :-2] / f_diff[:-1]
    up = slopes[:, 2:] / f_diff[1:]
    fb = np.maximum(0.0, np.minimum(down, up))
    return jnp.asarray(fb, jnp.float32)                    # (n_freq, n_mels)


def init_params(key, n_freq, n_mels, n_hidden, n_layers=3):
    params = {"fb": mel_filterbank(n_freq, n_mels)}
    k = 1.0 / np.sqrt(n_hidden)
    lstm = {}
    for layer in range(n_layers):
        n_in = n_mels if layer == 0 else 2 * n_hidden
        for d in range(2):  # 0 = forward, 1 = backward
            key, k1, k2, k3, k4 = jax.random.split(key, 5)
            w_ih = jax.random.uniform(k1, (4 * n_hidden, n_in), jnp.float32, -k, k)
            w_hh = jax.random.uniform(k2, (4 * n_hidden, n_hidden), jnp.float32, -k, k)
            b_ih = jax.random.uniform(k3, (4 * n_hidden,), jnp.float32, -k, k)
            b_hh = jax.random.uniform(k4, (4 * n_hidden,), jnp.float32, -k, k)
            lstm[(layer, d)] = (w_ih, w_hh, b_ih, b_hh)
    params["lstm"] = lstm
    key, k1, k2 = jax.random.split(key, 3)
    kc = 1.0 / np.sqrt(2 * n_hidden)  # Conv1d kernel_size=1 fan-in
    params["w_out"] = jax.random.uniform(k1, (n_freq, 2 * n_hidden), jnp.float32, -kc, kc)
    params["b_out"] = jax.random.uniform(k2, (n_freq,), jnp.float32, -kc, kc)
    return params


# --------------------------------------------------------------------------------------
# Full forward (Pallas) — mag_spec=True, log_spec=False (module defaults)
# --------------------------------------------------------------------------------------
def blstm_mask_forward(X, params, n_hidden, n_layers=3, time_chunk=64, row_chunk=512):
    batch_shape = X.shape[:-2]
    F_, T_ = X.shape[-2:]
    Xf = X.reshape((-1, F_, T_))
    B = Xf.shape[0]
    H = n_hidden
    R = T_ * B

    # (B, F, T) complex -> time-major rows (T*B, F).  XLA fuses real/imag + transpose.
    xre2 = jnp.transpose(jnp.real(Xf).astype(jnp.float32), (2, 0, 1)).reshape(R, F_)
    xim2 = jnp.transpose(jnp.imag(Xf).astype(jnp.float32), (2, 0, 1)).reshape(R, F_)

    # Row / time chunk sizes (bounded so blocks fit VMEM on v5e/v6e/v7x for long audio).
    rc = R if R <= row_chunk else row_chunk
    tc = T_ if T_ <= time_chunk else time_chunk
    Tp = ((T_ + tc - 1) // tc) * tc

    # Layer-0 gates: fused mag^2 + mel + input projection for both directions.
    w0t = jnp.stack([params["lstm"][(0, 0)][0].T,
                     params["lstm"][(0, 1)][0].T])                         # (2, M, 4H)
    b0 = jnp.stack([(params["lstm"][(0, 0)][2] + params["lstm"][(0, 0)][3]).reshape(1, 4 * H),
                    (params["lstm"][(0, 1)][2] + params["lstm"][(0, 1)][3]).reshape(1, 4 * H)])
    gates = mel_gates0(xre2, xim2, params["fb"], w0t, b0, rc)              # (2, R, 4H)

    h2 = None
    for layer in range(n_layers):
        whh_t = jnp.stack([params["lstm"][(layer, 0)][1].T,
                           params["lstm"][(layer, 1)][1].T])               # (2, H, 4H)
        g4 = gates.reshape(2, T_, B, 4 * H)
        if Tp != T_:
            # zero gates at padded steps keep (h, c) == 0 -> exact semantics (see kernel)
            g4 = jnp.pad(g4, ((0, 0), (0, Tp - T_), (0, 0), (0, 0)))
        h_dirs = lstm_bidir_layer(g4, whh_t, tc)                           # (2, Tp, B, H)
        if Tp != T_:
            h_dirs = h_dirs[:, :T_]
        h2 = h_dirs.reshape(2, R, H)                                       # (2, T*B, H)

        if layer + 1 < n_layers:
            # Next layer's hoisted input projection (no concat: weight split by fwd/bwd
            # half; both output directions computed per grid point -> h2 read once).
            wt4 = jnp.stack([params["lstm"][(layer + 1, 0)][0][:, :H].T,
                             params["lstm"][(layer + 1, 0)][0][:, H:].T,
                             params["lstm"][(layer + 1, 1)][0][:, :H].T,
                             params["lstm"][(layer + 1, 1)][0][:, H:].T])  # (4, H, 4H)
            bn = jnp.stack([
                (params["lstm"][(layer + 1, d)][2]
                 + params["lstm"][(layer + 1, d)][3]).reshape(1, 4 * H)
                for d in range(2)])                                        # (2, 1, 4H)
            gates = gates_from_h(h2, wt4, bn, rc)                          # (2, R, 4H)
        # TODO(synk): training-mode dropout between LSTM layers not implemented (inference).

    woutT = jnp.stack([params["w_out"][:, :H].T, params["w_out"][:, H:].T])  # (2, H, F)
    mask2 = out_mask(h2, woutT, params["b_out"].reshape(1, F_), rc)          # (T*B, F)
    masks = jnp.transpose(mask2.reshape(T_, B, F_), (1, 2, 0))               # (B, F, T)
    return masks.reshape(batch_shape + (F_, T_))


# --------------------------------------------------------------------------------------
# Pure-JAX reference (for correctness check)
# --------------------------------------------------------------------------------------
def ref_forward(X, params, n_hidden, n_layers=3):
    batch_shape = X.shape[:-2]
    F_, T_ = X.shape[-2:]
    Xf = X.reshape((-1, F_, T_))
    P = jnp.real(Xf) ** 2 + jnp.imag(Xf) ** 2
    mel = jnp.einsum("fm,bft->bmt", params["fb"], P)
    x_seq = jnp.transpose(mel, (2, 0, 1))
    H = n_hidden
    for layer in range(n_layers):
        outs = []
        for d in range(2):
            w_ih, w_hh, b_ih, b_hh = params["lstm"][(layer, d)]
            xs = x_seq[::-1] if d == 1 else x_seq

            def step(carry, x_t):
                h, c = carry
                g = x_t @ w_ih.T + h @ w_hh.T + b_ih + b_hh
                i = jax.nn.sigmoid(g[:, :H])
                f = jax.nn.sigmoid(g[:, H:2 * H])
                gg = jnp.tanh(g[:, 2 * H:3 * H])
                o = jax.nn.sigmoid(g[:, 3 * H:])
                c = f * c + i * gg
                h = o * jnp.tanh(c)
                return (h, c), h

            Bb = xs.shape[1]
            init = (jnp.zeros((Bb, H), jnp.float32), jnp.zeros((Bb, H), jnp.float32))
            _, hs = jax.lax.scan(step, init, xs)
            if d == 1:
                hs = hs[::-1]
            outs.append(hs)
        x_seq = jnp.concatenate(outs, axis=-1)
    h = jnp.transpose(x_seq, (1, 2, 0))
    y = jnp.einsum("fc,bct->bft", params["w_out"], h) + params["b_out"][None, :, None]
    w = jax.nn.sigmoid(y) * (1.0 - 1e-5) + 1e-5
    return w.reshape(batch_shape + (F_, T_))


if __name__ == "__main__":
    B, n_freq, n_frames = 2, 16, 8
    n_bottleneck, n_hidden = 8, 32

    key = jax.random.PRNGKey(0)
    key, kp, kr, ki = jax.random.split(key, 4)
    params = init_params(kp, n_freq, n_bottleneck, n_hidden)

    X = (jax.random.normal(kr, (B, n_freq, n_frames), jnp.float32)
         + 1j * jax.random.normal(ki, (B, n_freq, n_frames), jnp.float32)).astype(jnp.complex64)

    out = blstm_mask_forward(X, params, n_hidden)
    out = jax.block_until_ready(out)

    ref = ref_forward(X, params, n_hidden)
    assert out.shape == (B, n_freq, n_frames), out.shape
    assert bool(jnp.all(jnp.isfinite(out)))
    assert bool(jnp.allclose(out, ref, rtol=1e-4, atol=1e-4)), float(jnp.max(jnp.abs(out - ref)))

    print("KERNEL_OK")
</pallas_src>

<mosaic_0001>
module attributes {stable_mosaic.version = 11 : i64} {
  func.func @mel_gates0_kernel(%arg0: i32, %arg1: memref<16x16xf32, #tpu.memory_space<vmem>>, %arg2: memref<16x16xf32, #tpu.memory_space<vmem>>, %arg3: memref<16x8xf32, #tpu.memory_space<vmem>>, %arg4: memref<2x8x128xf32, #tpu.memory_space<vmem>>, %arg5: memref<2x1x128xf32, #tpu.memory_space<vmem>>, %arg6: memref<2x16x128xf32, #tpu.memory_space<vmem>>) attributes {dimension_semantics = [#tpu.dimension_semantics<parallel>], iteration_bounds = array<i64: 1>, scalar_prefetch = 0 : i64, scratch_operands = 0 : i64, tpu.core_type = #tpu.core_type<tc>, window_params = [{transform_indices = @transform_0, window_bounds = array<i64: 16, 16>}, {transform_indices = @transform_1, window_bounds = array<i64: 16, 16>}, {pipeline_mode = #tpu.pipeline_mode<synchronous>, transform_indices = @transform_2, window_bounds = array<i64: 16, 8>}, {pipeline_mode = #tpu.pipeline_mode<synchronous>, transform_indices = @transform_3, window_bounds = array<i64: 2, 8, 128>}, {pipeline_mode = #tpu.pipeline_mode<synchronous>, transform_indices = @transform_4, window_bounds = array<i64: 2, 1, 128>}, {transform_indices = @transform_5, window_bounds = array<i64: 2, 16, 128>}]} {
    %c0 = arith.constant 0 : index
    %c0_0 = arith.constant 0 : index
    %0 = vector.load %arg1[%c0, %c0_0] : memref<16x16xf32, #tpu.memory_space<vmem>>, vector<16x16xf32>
    %c0_1 = arith.constant 0 : index
    %c0_2 = arith.constant 0 : index
    %1 = vector.load %arg1[%c0_1, %c0_2] : memref<16x16xf32, #tpu.memory_space<vmem>>, vector<16x16xf32>
    %2 = arith.mulf %0, %1 : vector<16x16xf32>
    %c0_3 = arith.constant 0 : index
    %c0_4 = arith.constant 0 : index
    %3 = vector.load %arg2[%c0_3, %c0_4] : memref<16x16xf32, #tpu.memory_space<vmem>>, vector<16x16xf32>
    %c0_5 = arith.constant 0 : index
    %c0_6 = arith.constant 0 : index
    %4 = vector.load %arg2[%c0_5, %c0_6] : memref<16x16xf32, #tpu.memory_space<vmem>>, vector<16x16xf32>
    %5 = arith.mulf %3, %4 : vector<16x16xf32>
    %6 = arith.addf %2, %5 : vector<16x16xf32>
    %c0_7 = arith.constant 0 : index
    %c0_8 = arith.constant 0 : index
    %7 = vector.load %arg3[%c0_7, %c0_8] : memref<16x8xf32, #tpu.memory_space<vmem>>, vector<16x8xf32>
    %cst = arith.constant dense<0.000000e+00> : vector<16x8xf32>
    %8 = tpu.matmul %6, %7, %cst {dimension_numbers = #tpu.dot_dimension_numbers<[1], [0], [0], [1], [0, 0, 1, 1], [], []>} : vector<16x16xf32>, vector<16x8xf32>, vector<16x8xf32> -> vector<16x8xf32>
    %c0_9 = arith.constant 0 : index
    %c0_10 = arith.constant 0 : index
    %c0_11 = arith.constant 0 : index
    %9 = vector.load %arg4[%c0_9, %c0_10, %c0_11] : memref<2x8x128xf32, #tpu.memory_space<vmem>>, vector<1x8x128xf32>
    %10 = vector.shape_cast %9 : vector<1x8x128xf32> to vector<8x128xf32>
    %cst_12 = arith.constant dense<0.000000e+00> : vector<16x128xf32>
    %11 = tpu.matmul %8, %10, %cst_12 {dimension_numbers = #tpu.dot_dimension_numbers<[1], [0], [0], [1], [0, 0, 1, 1], [], []>} : vector<16x8xf32>, vector<8x128xf32>, vector<16x128xf32> -> vector<16x128xf32>
    %c0_13 = arith.constant 0 : index
    %c0_14 = arith.constant 0 : index
    %c0_15 = arith.constant 0 : index
    %12 = vector.load %arg5[%c0_13, %c0_14, %c0_15] : memref<2x1x128xf32, #tpu.memory_space<vmem>>, vector<1x1x128xf32>
    %13 = vector.shape_cast %12 : vector<1x1x128xf32> to vector<1x128xf32>
    %14 = vector.broadcast %13 : vector<1x128xf32> to vector<16x128xf32>
    %15 = arith.addf %11, %14 : vector<16x128xf32>
    %c1 = arith.constant 1 : index
    %c0_16 = arith.constant 0 : index
    %c0_17 = arith.constant 0 : index
    %16 = vector.load %arg4[%c1, %c0_16, %c0_17] : memref<2x8x128xf32, #tpu.memory_space<vmem>>, vector<1x8x128xf32>
    %17 = vector.shape_cast %16 : vector<1x8x128xf32> to vector<8x128xf32>
    %cst_18 = arith.constant dense<0.000000e+00> : vector<16x128xf32>
    %18 = tpu.matmul %8, %17, %cst_18 {dimension_numbers = #tpu.dot_dimension_numbers<[1], [0], [0], [1], [0, 0, 1, 1], [], []>} : vector<16x8xf32>, vector<8x128xf32>, vector<16x128xf32> -> vector<16x128xf32>
    %c1_19 = arith.constant 1 : index
    %c0_20 = arith.constant 0 : index
    %c0_21 = arith.constant 0 : index
    %19 = vector.load %arg5[%c1_19, %c0_20, %c0_21] : memref<2x1x128xf32, #tpu.memory_space<vmem>>, vector<1x1x128xf32>
    %20 = vector.shape_cast %19 : vector<1x1x128xf32> to vector<1x128xf32>
    %21 = vector.broadcast %20 : vector<1x128xf32> to vector<16x128xf32>
    %22 = arith.addf %18, %21 : vector<16x128xf32>
    %c0_22 = arith.constant 0 : index
    %c0_23 = arith.constant 0 : index
    %c0_24 = arith.constant 0 : index
    %23 = vector.load %arg6[%c0_22, %c0_23, %c0_24] : memref<2x16x128xf32, #tpu.memory_space<vmem>>, vector<1x16x128xf32>
    %24 = vector.shape_cast %23 : vector<1x16x128xf32> to vector<16x128xf32>
    %25 = vector.shape_cast %15 : vector<16x128xf32> to vector<1x16x128xf32>
    tpu.vector_store %arg6[%c0_22, %c0_23, %c0_24], %25 {strides = array<i32>} : memref<2x16x128xf32, #tpu.memory_space<vmem>>, vector<1x16x128xf32>,
    %c1_25 = arith.constant 1 : index
    %c0_26 = arith.constant 0 : index
    %c0_27 = arith.constant 0 : index
    %26 = vector.load %arg6[%c1_25, %c0_26, %c0_27] : memref<2x16x128xf32, #tpu.memory_space<vmem>>, vector<1x16x128xf32>
    %27 = vector.shape_cast %26 : vector<1x16x128xf32> to vector<16x128xf32>
    %28 = vector.shape_cast %22 : vector<16x128xf32> to vector<1x16x128xf32>
    tpu.vector_store %arg6[%c1_25, %c0_26, %c0_27], %28 {strides = array<i32>} : memref<2x16x128xf32, #tpu.memory_space<vmem>>, vector<1x16x128xf32>,
    return
  }
  func.func @transform_0(%arg0: i32) -> (i32, i32) {
    %c0_i32 = arith.constant 0 : i32
    %c0_i32_0 = arith.constant 0 : i32
    return %arg0, %c0_i32 : i32, i32
  }
  func.func @transform_1(%arg0: i32) -> (i32, i32) {
    %c0_i32 = arith.constant 0 : i32
    %c0_i32_0 = arith.constant 0 : i32
    return %arg0, %c0_i32 : i32, i32
  }
  func.func @transform_2(%arg0: i32) -> (i32, i32) {
    %c0_i32 = arith.constant 0 : i32
    %c0_i32_0 = arith.constant 0 : i32
    %c0_i32_1 = arith.constant 0 : i32
    return %c0_i32, %c0_i32_0 : i32, i32
  }
  func.func @transform_3(%arg0: i32) -> (i32, i32, i32) {
    %c0_i32 = arith.constant 0 : i32
    %c0_i32_0 = arith.constant 0 : i32
    %c0_i32_1 = arith.constant 0 : i32
    %c0_i32_2 = arith.constant 0 : i32
    return %c0_i32, %c0_i32_0, %c0_i32_1 : i32, i32, i32
  }
  func.func @transform_4(%arg0: i32) -> (i32, i32, i32) {
    %c0_i32 = arith.constant 0 : i32
    %c0_i32_0 = arith.constant 0 : i32
    %c0_i32_1 = arith.constant 0 : i32
    %c0_i32_2 = arith.constant 0 : i32
    return %c0_i32, %c0_i32_0, %c0_i32_1 : i32, i32, i32
  }
  func.func @transform_5(%arg0: i32) -> (i32, i32, i32) {
    %c0_i32 = arith.constant 0 : i32
    %c0_i32_0 = arith.constant 0 : i32
    %c0_i32_1 = arith.constant 0 : i32
    return %c0_i32, %arg0, %c0_i32_0 : i32, i32, i32
  }
}

</mosaic_0001>

<bundles_post_ra>
// kernel: tpu_custom_call.1
= control target key start
LH: loop header
LB: loop body
LE: loop exit
PB: predicated region body
PF: predicated region fallthrough
CT: control target
= control target key end

     0   :  { %10 = vsyncpa [#allocation3], 0  ;;  %s350_s0 = inlined_call_operand.vmem [shape: f32[16,16], index: 0, kind: input, shape index: {}]   ;;  %s351_s1 = inlined_call_operand.hbm [shape: f32[16,16], index: 1, kind: input, shape index: {}]   ;;  %s352_s2 = inlined_call_operand.vmem [shape: f32[16,8], index: 2, kind: input, shape index: {}]   ;;  %s353_s3 = inlined_call_operand.hbm [shape: f32[2,8,128], index: 3, kind: input, shape index: {}]   ;;  %s354_s4 = inlined_call_operand.vmem [shape: f32[2,1,128], index: 4, kind: input, shape index: {}]   ;;  %s355_s5 = inlined_call_operand.hbm [shape: f32[2,16,128], index: 5, kind: output, shape index: {}]  }
   0x1   :  { %11 = vsyncpa [#allocation6], 0 }
   0x2   :  { %12 = vsyncpa [#allocation4], 0  ;;  %s19_s20 = sshll.u32 %s351_s1, 4  ;;  %s279_s21 = smov [#allocation2]   ;;  %s20_s20 = int_to_ptr.hbm [resolvable:$true] %s19_s20 }
   0x3   :  { %s21_s22 = sshll.u32 %s279_s21, 4  ;;  %s34_s25 = sshll.u32 %s353_s3, 4  ;;  %s22_s22 = int_to_ptr.vmem [resolvable:$true] %s21_s22  ;;  %s35_s25 = int_to_ptr.hbm [resolvable:$true] %s34_s25 }
   0x4   :  { %s280_s26 = smov 128   ;;  %s281_s27 = smov 8  }
   0x5   :  { %27 = dma.hbm_to_vmem [thread:$0]  %s20_s20, 256, %s22_s22, [#allocation3], %s280_s26, %s280_s26, %s281_s27  }
   0x6   :  { %s282_s28 = smov [#allocation5]  }
   0x7   :  { %s36_s29 = sshll.u32 %s282_s28, 4  ;;  %s37_s29 = int_to_ptr.vmem [resolvable:$true] %s36_s29 }
   0x8   :  { %42 = dma.hbm_to_vmem [thread:$0]  %s35_s25, 256, %s37_s29, [#allocation6], %s280_s26, %s280_s26, %s281_s27  }
   0x9   :  { %273 = dma.done.wait [#allocation3], 256  }
   0xa   :  { %274 = vsyncadd [#allocation3], 4294967040 }
   0xb   :  { %275 = dma.done.wait [#allocation6], 256  }
   0xc   :  { %276 = vsyncadd [#allocation6], 4294967040  ;;  %v64_v0 = vld [vmem:[%s352_s2 + $0x8] sm:$0xff]  ;;  %v63_v1 = vld [vmem:[%s352_s2] sm:$0xff]  ;;  %vm65_vm0 = vcmask 130048   ;;  %vm100_vm1 = vcmask 64512  }
   0xd   :  { %v53_v2 = vld [vmem:[%s350_s0] sm:$0xff]  ;;  %86 = vmatpush.msra.mxu0 %v64_v0  ;;  %192 = vmatpush.msra.mxu3 %v64_v0  ;;  %v54_v5 = vld [vmem:[%s350_s0 + $0x8] sm:$0xff]  ;;  %v95_v12 = vld [vmem:[#allocation5] sm:$0xff]  ;;  %s283_s13 = smov [#allocation7]   ;;  %s171_s17 = sshll.u32 %s355_s5, 4  ;;  %s172_s17 = int_to_ptr.hbm [resolvable:$true] %s171_s17 }
   0xe   :  { %v55_v3 = vmul.f32 %v53_v2, %v53_v2  ;;  %v57_v4 = vld [vmem:[#allocation2] sm:$0xff]  ;;  %v58_v6 = vld [vmem:[#allocation2 + $0x8] sm:$0xff]  ;;  %v56_v8 = vmul.f32 %v54_v5, %v54_v5  ;;  %v131_v13 = vld [vmem:[#allocation5 + $0x8] sm:$0xff]  ;;  %122 = vmatpush.msra.mxu1 %v95_v12  ;;  %s169_s14 = sshll.u32 %s283_s13, 4  ;;  %s170_s14 = int_to_ptr.vmem [resolvable:$true] %s169_s14 }
   0xf   :  { %v59_v7 = vmul.f32 %v57_v4, %v57_v4  ;;  %v60_v9 = vmul.f32 %v58_v6, %v58_v6  ;;  %87 = vmatpush.msra.mxu0 %v63_v1  ;;  %193 = vmatpush.msra.mxu3 %v63_v1  ;;  %v199_v16 = vld [vmem:[%s354_s4] ss:$0 sm:$0xff]  ;;  %v200_v19 = vld [vmem:[%s354_s4 + $0x1] ss:$0 sm:$0xff] }
  0x10   :  { %152 = vmatpush.msra.mxu2 %v131_v13 }
  0x11   :  { %v61_v10 = vadd.f32 %v59_v7, %v55_v3  ;;  %v62_v11 = vadd.f32 %v60_v9, %v56_v8 }
  0x13   :  { %185 = vmatmul.msk.f32.vlgmr.msra.gmra.mxu0 %vm65_vm0, %v61_v10  ;;  %186 = vmatmul.msk.f32.vlgmr.msra.gmra.mxu3 %vm65_vm0, %v62_v11 }
  0x90   :  { %v89_v14 = vpop.f32.mrf.mxu0 }
  0x91   :  { %187 = vmatmul.msk.f32.vlgmr.msra.gmra.mxu1 %vm100_vm1, %v89_v14  ;;  %190 = vmatmul.msk.f32.vlgmr.msra.gmra.mxu2 %vm100_vm1, %v89_v14 }
  0x96   :  { %v92_v15 = vpop.f32.mrf.mxu3 }
  0x99   :  { %188 = vmatmul.msk.f32.gmra.mxu1 %vm100_vm1, %v92_v15  ;;  %191 = vmatmul.msk.f32.gmra.mxu2 %vm100_vm1, %v92_v15 }
 0x10e   :  { %v124_v17 = vpop.f32.mrf.mxu1 }
 0x10f   :  { %v125_v18 = vadd.f32 %v199_v16, %v124_v17 }
 0x111   :  { %160 = vst [vmem:[#allocation7] sm:$0xff] %v125_v18 }
 0x114   :  { %v154_v20 = vpop.f32.mrf.mxu2 }
 0x115   :  { %v155_v21 = vadd.f32 %v200_v19, %v154_v20 }
 0x116   :  { %v127_v22 = vpop.f32.mrf.mxu1 }
 0x117   :  { %163 = vst [vmem:[#allocation7 + $0x10] sm:$0xff] %v155_v21  ;;  %v128_v23 = vadd.f32 %v199_v16, %v127_v22 }
 0x119   :  { %161 = vst [vmem:[#allocation7 + $0x8] sm:$0xff] %v128_v23 }
 0x11c   :  { %v157_v24 = vpop.f32.mrf.mxu2 }
 0x11d   :  { %v158_v25 = vadd.f32 %v200_v19, %v157_v24 }
 0x11f   :  { %164 = vst [vmem:[#allocation7 + $0x18] sm:$0xff] %v158_v25 }
 0x120   :  { %177 = dma.vmem_to_hbm [thread:$0]  %s170_s14, 512, %s172_s17, [#allocation4], %s280_s26, %s280_s26, %s281_s27  }
 0x121   :  { %277 = dma.done.wait [#allocation4], 512  }
 0x122   :  { %278 = vsyncadd [#allocation4], 4294966784 }
 0x123   :  { %182 = vsyncpa [#allocation3], 1 }
 0x124   :  { %183 = vsyncpa [#allocation6], 1 }
 0x125   :  { %184 = vsyncpa [#allocation4], 1 }

</bundles_post_ra>
